<compile_context>
chip_gen: v5e
topology: v5e:2x2
jax: 0.10.0
libtpu: 0.0.40
codegen_flags: <defaults>
</compile_context>

<pallas_src>
import functools

import jax
import jax.numpy as jnp
from jax import lax
from jax.experimental import pallas as pl
from jax.experimental.pallas import tpu as pltpu

MARGIN = 0.2
NMAX = 1

_NEG_LARGE = -1e30  # effectively -inf for f32 similarity scores

_TILE_I_TARGET = 512          # large row tile: amortize per-step overhead, cut caps re-reads
_TILE_J_TARGET = 256          # fills the 256-wide MXU on v6e/v7x; fine on v5e's 4x128 MXU
_VMEM_BUDGET = 40 * 1024 * 1024  # leave pipelining headroom inside v7x's 64 MiB


def _vmem_estimate(tile_i, tile_j, d, itemsize):
    # double-buffered imgs + caps input blocks, plus the live f32 scores block
    return 2 * (tile_i + tile_j) * d * itemsize + 4 * tile_i * tile_j


def _pick_tiles(n, d, itemsize, tile_i, tile_j):
    if tile_j is None:
        tile_j = n if n <= _TILE_J_TARGET else _TILE_J_TARGET
    else:
        tile_j = min(int(tile_j), n)
        assert tile_j == n or tile_j % 8 == 0, "tile_j must be a multiple of 8 or == N"
    if tile_i is None:
        tile_i = n if n <= _TILE_I_TARGET else _TILE_I_TARGET
        # Shrink the row tile (only when it halves cleanly) to stay inside the
        # VMEM budget (sized for v7x; generous on v5e/v6e's 128 MiB).
        while (tile_i > 8 and tile_i % 16 == 0
               and _vmem_estimate(tile_i, tile_j, d, itemsize) > _VMEM_BUDGET):
            tile_i //= 2
    else:
        tile_i = min(int(tile_i), n)
        assert tile_i == n or tile_i % 8 == 0, "tile_i must be a multiple of 8 or == N"
    return tile_i, tile_j


def _hard_neg_loss_kernel(imgs_ref, caps_ref, out_ref,
                          row_max_s, diag_row_s, col_max_s, diag_col_s, acc_s,
                          *, n, tile_i, tile_j, margin, ragged_i, ragged_j):
    i = pl.program_id(0)           # image / row block
    j = pl.program_id(1)           # caption / column block (inner, reduction axis)
    ni = pl.num_programs(0)
    nj = pl.num_programs(1)

    @pl.when(jnp.logical_and(i == 0, j == 0))
    def _init_global():
        col_max_s[...] = jnp.full(col_max_s.shape, _NEG_LARGE, jnp.float32)
        diag_col_s[...] = jnp.zeros(diag_col_s.shape, jnp.float32)
        acc_s[...] = jnp.zeros(acc_s.shape, jnp.float32)

    @pl.when(j == 0)
    def _init_row_block():
        row_max_s[...] = jnp.full(row_max_s.shape, _NEG_LARGE, jnp.float32)
        diag_row_s[...] = jnp.zeros(diag_row_s.shape, jnp.float32)

    imgs = imgs_ref[...]           # (tile_i, D) native dtype (bf16 stays bf16)
    caps = caps_ref[...]           # (tile_j, D)

    # scores = imgs @ caps.T without materializing the transpose; f32 MXU accumulation.
    scores = lax.dot_general(
        imgs, caps,
        dimension_numbers=(((1,), (1,)), ((), ())),
        preferred_element_type=jnp.float32,
    )                              # (tile_i, tile_j) f32

    row_lo = i * tile_i
    col_lo = j * tile_j
    # Does this (row-block, col-block) tile intersect the global diagonal?
    # (Tiles are asymmetric, so this is a range-overlap test, not i == j.)
    has_diag = jnp.logical_and(row_lo < col_lo + tile_j, col_lo < row_lo + tile_i)

    # Diagonal-containing blocks only: accumulate the diagonal (row and lane
    # form) straight from the existing scores block.
    @pl.when(has_diag)
    def _diag():
        row_g = row_lo + lax.broadcasted_iota(jnp.int32, (tile_i, tile_j), 0)
        col_g = col_lo + lax.broadcasted_iota(jnp.int32, (tile_i, tile_j), 1)
        masked = jnp.where(row_g == col_g, scores, 0.0)
        diag_row_s[...] = diag_row_s[...] + jnp.sum(masked, axis=1, keepdims=True)
        diag_col_s[j] = diag_col_s[j] + jnp.sum(masked, axis=0, keepdims=True)

    # scores - 2 * diag(diag)  ==  flip the sign of the diagonal only; done
    # only on diagonal-containing blocks (interior blocks pay nothing).
    def _flip_diag(s):
        row_g = row_lo + lax.broadcasted_iota(jnp.int32, s.shape, 0)
        col_g = col_lo + lax.broadcasted_iota(jnp.int32, s.shape, 1)
        return jnp.where(row_g == col_g, -s, s)

    scores_mod = lax.cond(has_diag, _flip_diag, lambda s: s, scores)

    # Ragged-edge masking: without wrapper padding, out-of-range rows/columns
    # of the last blocks contain unspecified VMEM data and must not reach the
    # running maxima.  Only the last column / row block pays for this.
    if ragged_j:
        def _mask_cols(s):
            col_g = col_lo + lax.broadcasted_iota(jnp.int32, s.shape, 1)
            return jnp.where(col_g < n, s, _NEG_LARGE)
        scores_mod = lax.cond(j == nj - 1, _mask_cols, lambda s: s, scores_mod)
    if ragged_i:
        def _mask_rows(s):
            row_g = row_lo + lax.broadcasted_iota(jnp.int32, s.shape, 0)
            return jnp.where(row_g < n, s, _NEG_LARGE)
        scores_mod = lax.cond(i == ni - 1, _mask_rows, lambda s: s, scores_mod)

    # Running hardest-negative maxima.
    row_max_s[...] = jnp.maximum(row_max_s[...],
                                 jnp.max(scores_mod, axis=1, keepdims=True))
    col_max_s[j] = jnp.maximum(col_max_s[j],
                               jnp.max(scores_mod, axis=0, keepdims=True))

    # Row-block finalize: hardest image->caption negatives (neg_img partial).
    @pl.when(j == nj - 1)
    def _row_finalize():
        term = jnp.maximum(row_max_s[...] + (margin - diag_row_s[...]), 0.0)
        if ragged_i:
            row_g = row_lo + lax.broadcasted_iota(jnp.int32, (tile_i, 1), 0)
            term = jnp.where(row_g < n, term, 0.0)
        acc_s[...] = acc_s[...] + jnp.sum(term)

    # Global finalize: hardest caption->image negatives (neg_cap) + scalar out.
    @pl.when(jnp.logical_and(i == ni - 1, j == nj - 1))
    def _finalize():
        cterm = jnp.maximum(col_max_s[...] + (margin - diag_col_s[...]), 0.0)
        if ragged_j:
            gj_blocks = col_max_s.shape[0]
            col_g = (lax.broadcasted_iota(jnp.int32, (gj_blocks, 1, tile_j), 0) * tile_j
                     + lax.broadcasted_iota(jnp.int32, (gj_blocks, 1, tile_j), 2))
            cterm = jnp.where(col_g < n, cterm, 0.0)
        out_ref[...] = acc_s[...] + jnp.sum(cterm)


def hard_negative_contrastive_loss(imgs, caps, *, margin=MARGIN, nmax=NMAX,
                                   tile_i=None, tile_j=None, mxu_dtype=None):
    """imgs: (N, D), caps: (N, D) -> scalar float32 loss (nmax=1).

    mxu_dtype=jnp.bfloat16 halves input DMA bytes and hits the bf16 MXU rate
    (f32 accumulation kept); scores then carry bf16 precision.
    """
    assert nmax == 1, "only nmax=1 (the module default) is implemented"
    assert imgs.ndim == 2 and caps.ndim == 2
    assert imgs.shape == caps.shape, "imgs and caps must share the same (N, D)"
    n, d = imgs.shape

    if mxu_dtype is not None:
        imgs = imgs.astype(mxu_dtype)
        caps = caps.astype(mxu_dtype)

    itemsize = jnp.dtype(imgs.dtype).itemsize
    tile_i, tile_j = _pick_tiles(n, d, itemsize, tile_i, tile_j)
    gi = pl.cdiv(n, tile_i)
    gj = pl.cdiv(n, tile_j)

    scratch_bytes = 4 * (2 * tile_i + 2 * gj * tile_j + 1)
    vmem_limit = int(min(max(2 * _vmem_estimate(tile_i, tile_j, d, itemsize)
                             + scratch_bytes,
                             32 * 1024 * 1024),
                         64 * 1024 * 1024))

    kernel = functools.partial(
        _hard_neg_loss_kernel,
        n=n, tile_i=tile_i, tile_j=tile_j, margin=float(margin),
        ragged_i=(n % tile_i != 0), ragged_j=(n % tile_j != 0))

    out = pl.pallas_call(
        kernel,
        out_shape=jax.ShapeDtypeStruct((1, 1), jnp.float32),
        grid_spec=pltpu.PrefetchScalarGridSpec(
            num_scalar_prefetch=0,
            grid=(gi, gj),
            in_specs=[
                pl.BlockSpec((tile_i, d), lambda i, j: (i, 0)),  # image rows (resident over j)
                pl.BlockSpec((tile_j, d), lambda i, j: (j, 0)),  # caption rows (streamed)
            ],
            out_specs=pl.BlockSpec((1, 1), lambda i, j: (0, 0)),
            scratch_shapes=[
                pltpu.VMEM((tile_i, 1), jnp.float32),       # row_max (current row block)
                pltpu.VMEM((tile_i, 1), jnp.float32),       # diag, row form (current row block)
                pltpu.VMEM((gj, 1, tile_j), jnp.float32),   # col_max (all column blocks)
                pltpu.VMEM((gj, 1, tile_j), jnp.float32),   # diag, lane form (all column blocks)
                pltpu.VMEM((1, 1), jnp.float32),            # running neg_img sum
            ],
        ),
        compiler_params=pltpu.CompilerParams(
            dimension_semantics=("arbitrary", "arbitrary"),
            vmem_limit_bytes=vmem_limit),
    )(imgs, caps)
    return out[0, 0]


def _reference(imgs, caps, margin=MARGIN):
    # Plain-JAX mirror of the PyTorch forward (nmax=1).
    scores = imgs @ caps.T
    diag = jnp.diag(scores)
    scores = scores - 2.0 * jnp.diag(diag)
    max_c = jnp.max(scores, axis=0)          # sorted_cap[:1, :]
    max_i = jnp.max(scores, axis=1)          # sorted_img[:, :1]
    neg_cap = jnp.sum(jnp.maximum(max_c + (margin - diag), 0.0))
    neg_img = jnp.sum(jnp.maximum(max_i + (margin - diag), 0.0))
    return neg_cap + neg_img


if __name__ == "__main__":
    key = jax.random.PRNGKey(0)
    k1, k2, k3, k4 = jax.random.split(key, 4)

    # Test 1: small, single-block path (N x N scores fit in one tile).
    N, D = 8, 32
    imgs = jax.random.normal(k1, (N, D), dtype=jnp.float32)
    caps = jax.random.normal(k2, (N, D), dtype=jnp.float32)
    imgs = imgs / jnp.linalg.norm(imgs, axis=-1, keepdims=True)
    caps = caps / jnp.linalg.norm(caps, axis=-1, keepdims=True)
    loss = jax.block_until_ready(hard_negative_contrastive_loss(imgs, caps))
    ref = _reference(imgs, caps)
    assert jnp.allclose(loss, ref, rtol=1e-4, atol=1e-4), (loss, ref)

    # Test 2: asymmetric tiles + ragged edge blocks (grid (2, 3), no wrapper
    # padding) exercising the diagonal-overlap gating and garbage masking.
    N2, D2 = 20, 48
    imgs2 = jax.random.normal(k3, (N2, D2), dtype=jnp.float32)
    caps2 = jax.random.normal(k4, (N2, D2), dtype=jnp.float32)
    imgs2 = imgs2 / jnp.linalg.norm(imgs2, axis=-1, keepdims=True)
    caps2 = caps2 / jnp.linalg.norm(caps2, axis=-1, keepdims=True)
    loss2 = jax.block_until_ready(
        hard_negative_contrastive_loss(imgs2, caps2, tile_i=16, tile_j=8))
    ref2 = _reference(imgs2, caps2)
    assert jnp.allclose(loss2, ref2, rtol=1e-4, atol=1e-4), (loss2, ref2)

    print("KERNEL_OK")
</pallas_src>

<mosaic_0001>
module attributes {stable_mosaic.version = 11 : i64} {
  func.func @_hard_neg_loss_kernel(%arg0: i32, %arg1: i32, %arg2: memref<8x32xf32, #tpu.memory_space<vmem>>, %arg3: memref<8x32xf32, #tpu.memory_space<vmem>>, %arg4: memref<1x1xf32, #tpu.memory_space<vmem>>, %arg5: memref<8x1xf32, #tpu.memory_space<vmem>>, %arg6: memref<8x1xf32, #tpu.memory_space<vmem>>, %arg7: memref<1x1x8xf32, #tpu.memory_space<vmem>>, %arg8: memref<1x1x8xf32, #tpu.memory_space<vmem>>, %arg9: memref<1x1xf32, #tpu.memory_space<vmem>>) attributes {dimension_semantics = [#tpu.dimension_semantics<arbitrary>, #tpu.dimension_semantics<arbitrary>], iteration_bounds = array<i64: 1, 1>, scalar_prefetch = 0 : i64, scratch_operands = 5 : i64, tpu.core_type = #tpu.core_type<tc>, window_params = [{transform_indices = @transform_0, window_bounds = array<i64: 8, 32>}, {transform_indices = @transform_1, window_bounds = array<i64: 8, 32>}, {pipeline_mode = #tpu.pipeline_mode<synchronous>, transform_indices = @transform_2, window_bounds = array<i64: 1, 1>}]} {
    %c0_i32 = arith.constant 0 : i32
    %0 = arith.cmpi eq, %arg0, %c0_i32 : i32
    %c0_i32_0 = arith.constant 0 : i32
    %1 = arith.cmpi eq, %arg1, %c0_i32_0 : i32
    %2 = arith.andi %0, %1 : i1
    %3 = arith.extui %2 : i1 to i32
    %c0_i32_1 = arith.constant 0 : i32
    %4 = arith.cmpi ne, %3, %c0_i32_1 : i32
    scf.if %4 {
      %cst_27 = arith.constant -1.000000e+30 : f32
      %46 = vector.broadcast %cst_27 : f32 to vector<1x1x8xf32>
      %c0_28 = arith.constant 0 : index
      %c0_29 = arith.constant 0 : index
      %c0_30 = arith.constant 0 : index
      %47 = vector.load %arg7[%c0_28, %c0_29, %c0_30] : memref<1x1x8xf32, #tpu.memory_space<vmem>>, vector<1x1x8xf32>
      tpu.vector_store %arg7[%c0_28, %c0_29, %c0_30], %46 {strides = array<i32>} : memref<1x1x8xf32, #tpu.memory_space<vmem>>, vector<1x1x8xf32>,
      %cst_31 = arith.constant 0.000000e+00 : f32
      %48 = vector.broadcast %cst_31 : f32 to vector<1x1x8xf32>
      %c0_32 = arith.constant 0 : index
      %c0_33 = arith.constant 0 : index
      %c0_34 = arith.constant 0 : index
      %49 = vector.load %arg8[%c0_32, %c0_33, %c0_34] : memref<1x1x8xf32, #tpu.memory_space<vmem>>, vector<1x1x8xf32>
      tpu.vector_store %arg8[%c0_32, %c0_33, %c0_34], %48 {strides = array<i32>} : memref<1x1x8xf32, #tpu.memory_space<vmem>>, vector<1x1x8xf32>,
      %cst_35 = arith.constant 0.000000e+00 : f32
      %50 = vector.broadcast %cst_35 : f32 to vector<1x1xf32>
      %c0_36 = arith.constant 0 : index
      %c0_37 = arith.constant 0 : index
      %51 = vector.load %arg9[%c0_36, %c0_37] : memref<1x1xf32, #tpu.memory_space<vmem>>, vector<1x1xf32>
      tpu.vector_store %arg9[%c0_36, %c0_37], %50 {strides = array<i32>} : memref<1x1xf32, #tpu.memory_space<vmem>>, vector<1x1xf32>,
    } else {
    }
    %c0_i32_2 = arith.constant 0 : i32
    %5 = arith.cmpi eq, %arg1, %c0_i32_2 : i32
    %6 = arith.extui %5 : i1 to i32
    %c0_i32_3 = arith.constant 0 : i32
    %7 = arith.cmpi ne, %6, %c0_i32_3 : i32
    scf.if %7 {
      %cst_27 = arith.constant -1.000000e+30 : f32
      %46 = vector.broadcast %cst_27 : f32 to vector<8x1xf32>
      %c0_28 = arith.constant 0 : index
      %c0_29 = arith.constant 0 : index
      %47 = vector.load %arg5[%c0_28, %c0_29] : memref<8x1xf32, #tpu.memory_space<vmem>>, vector<8x1xf32>
      tpu.vector_store %arg5[%c0_28, %c0_29], %46 {strides = array<i32>} : memref<8x1xf32, #tpu.memory_space<vmem>>, vector<8x1xf32>,
      %cst_30 = arith.constant 0.000000e+00 : f32
      %48 = vector.broadcast %cst_30 : f32 to vector<8x1xf32>
      %c0_31 = arith.constant 0 : index
      %c0_32 = arith.constant 0 : index
      %49 = vector.load %arg6[%c0_31, %c0_32] : memref<8x1xf32, #tpu.memory_space<vmem>>, vector<8x1xf32>
      tpu.vector_store %arg6[%c0_31, %c0_32], %48 {strides = array<i32>} : memref<8x1xf32, #tpu.memory_space<vmem>>, vector<8x1xf32>,
    } else {
    }
    %c0 = arith.constant 0 : index
    %c0_4 = arith.constant 0 : index
    %8 = vector.load %arg2[%c0, %c0_4] : memref<8x32xf32, #tpu.memory_space<vmem>>, vector<8x32xf32>
    %c0_5 = arith.constant 0 : index
    %c0_6 = arith.constant 0 : index
    %9 = vector.load %arg3[%c0_5, %c0_6] : memref<8x32xf32, #tpu.memory_space<vmem>>, vector<8x32xf32>
    %cst = arith.constant dense<0.000000e+00> : vector<8x8xf32>
    %10 = tpu.matmul %8, %9, %cst {dimension_numbers = #tpu.dot_dimension_numbers<[1], [1], [0], [0], [0, 0, 1, 0], [], []>} : vector<8x32xf32>, vector<8x32xf32>, vector<8x8xf32> -> vector<8x8xf32>
    %c8_i32 = arith.constant 8 : i32
    %11 = arith.muli %arg0, %c8_i32 : i32
    %c8_i32_7 = arith.constant 8 : i32
    %12 = arith.muli %arg1, %c8_i32_7 : i32
    %c8_i32_8 = arith.constant 8 : i32
    %13 = arith.addi %12, %c8_i32_8 : i32
    %14 = arith.cmpi slt, %11, %13 : i32
    %c8_i32_9 = arith.constant 8 : i32
    %15 = arith.addi %11, %c8_i32_9 : i32
    %16 = arith.cmpi slt, %12, %15 : i32
    %17 = arith.andi %14, %16 : i1
    %18 = arith.extui %17 : i1 to i32
    %c0_i32_10 = arith.constant 0 : i32
    %19 = arith.cmpi ne, %18, %c0_i32_10 : i32
    scf.if %19 {
      %46 = tpu.iota {dimensions = array<i32: 0>} : vector<8x8xi32>
      %47 = vector.broadcast %11 : i32 to vector<8x8xi32>
      %48 = arith.addi %47, %46 : vector<8x8xi32>
      %49 = tpu.iota {dimensions = array<i32: 1>} : vector<8x8xi32>
      %50 = vector.broadcast %12 : i32 to vector<8x8xi32>
      %51 = arith.addi %50, %49 : vector<8x8xi32>
      %52 = arith.cmpi eq, %48, %51 : vector<8x8xi32>
      %cst_27 = arith.constant 0.000000e+00 : f32
      %53 = vector.broadcast %cst_27 : f32 to vector<8x8xf32>
      %54 = arith.select %52, %10, %53 : vector<8x8xi1>, vector<8x8xf32>
      %c0_28 = arith.constant 0 : index
      %c0_29 = arith.constant 0 : index
      %55 = vector.load %arg6[%c0_28, %c0_29] : memref<8x1xf32, #tpu.memory_space<vmem>>, vector<8x1xf32>
      %cst_30 = arith.constant dense<0.000000e+00> : vector<8xf32>
      %56 = vector.multi_reduction <add>, %54, %cst_30 [1] : vector<8x8xf32> to vector<8xf32>
      %57 = vector.shape_cast %56 : vector<8xf32> to vector<8x1xf32>
      %58 = arith.addf %55, %57 : vector<8x1xf32>
      %c0_31 = arith.constant 0 : index
      %c0_32 = arith.constant 0 : index
      %59 = vector.load %arg6[%c0_31, %c0_32] : memref<8x1xf32, #tpu.memory_space<vmem>>, vector<8x1xf32>
      tpu.vector_store %arg6[%c0_31, %c0_32], %58 {strides = array<i32>} : memref<8x1xf32, #tpu.memory_space<vmem>>, vector<8x1xf32>,
      %60 = arith.index_cast %arg1 : i32 to index
      %c0_33 = arith.constant 0 : index
      %c0_34 = arith.constant 0 : index
      %61 = vector.load %arg8[%60, %c0_33, %c0_34] : memref<1x1x8xf32, #tpu.memory_space<vmem>>, vector<1x1x8xf32>
      %62 = vector.shape_cast %61 : vector<1x1x8xf32> to vector<1x8xf32>
      %cst_35 = arith.constant dense<0.000000e+00> : vector<8xf32>
      %63 = vector.multi_reduction <add>, %54, %cst_35 [0] : vector<8x8xf32> to vector<8xf32>
      %64 = vector.shape_cast %63 : vector<8xf32> to vector<1x8xf32>
      %65 = arith.addf %62, %64 : vector<1x8xf32>
      %66 = arith.index_cast %arg1 : i32 to index
      %c0_36 = arith.constant 0 : index
      %c0_37 = arith.constant 0 : index
      %67 = vector.load %arg8[%66, %c0_36, %c0_37] : memref<1x1x8xf32, #tpu.memory_space<vmem>>, vector<1x1x8xf32>
      %68 = vector.shape_cast %67 : vector<1x1x8xf32> to vector<1x8xf32>
      %69 = vector.shape_cast %65 : vector<1x8xf32> to vector<1x1x8xf32>
      tpu.vector_store %arg8[%66, %c0_36, %c0_37], %69 {strides = array<i32>} : memref<1x1x8xf32, #tpu.memory_space<vmem>>, vector<1x1x8xf32>,
    } else {
    }
    %20 = arith.extui %17 : i1 to i32
    %c0_i32_11 = arith.constant 0 : i32
    %21 = arith.cmpi ne, %20, %c0_i32_11 : i32
    %22 = scf.if %21 -> (vector<8x8xf32>) {
      %46 = tpu.iota {dimensions = array<i32: 0>} : vector<8x8xi32>
      %47 = vector.broadcast %11 : i32 to vector<8x8xi32>
      %48 = arith.addi %47, %46 : vector<8x8xi32>
      %49 = tpu.iota {dimensions = array<i32: 1>} : vector<8x8xi32>
      %50 = vector.broadcast %12 : i32 to vector<8x8xi32>
      %51 = arith.addi %50, %49 : vector<8x8xi32>
      %52 = arith.cmpi eq, %48, %51 : vector<8x8xi32>
      %cst_27 = arith.constant 0.000000e+00 : f32
      %53 = vector.broadcast %cst_27 : f32 to vector<8x8xf32>
      %54 = arith.subf %53, %10 : vector<8x8xf32>
      %55 = arith.select %52, %54, %10 : vector<8x8xi1>, vector<8x8xf32>
      scf.yield %55 : vector<8x8xf32>
    } else {
      scf.yield %10 : vector<8x8xf32>
    }
    %c0_12 = arith.constant 0 : index
    %c0_13 = arith.constant 0 : index
    %23 = vector.load %arg5[%c0_12, %c0_13] : memref<8x1xf32, #tpu.memory_space<vmem>>, vector<8x1xf32>
    %cst_14 = arith.constant dense<0xFF800000> : vector<8xf32>
    %24 = vector.multi_reduction <maximumf>, %22, %cst_14 [1] : vector<8x8xf32> to vector<8xf32>
    %25 = vector.shape_cast %24 : vector<8xf32> to vector<8x1xf32>
    %26 = arith.maximumf %23, %25 : vector<8x1xf32>
    %c0_15 = arith.constant 0 : index
    %c0_16 = arith.constant 0 : index
    %27 = vector.load %arg5[%c0_15, %c0_16] : memref<8x1xf32, #tpu.memory_space<vmem>>, vector<8x1xf32>
    tpu.vector_store %arg5[%c0_15, %c0_16], %26 {strides = array<i32>} : memref<8x1xf32, #tpu.memory_space<vmem>>, vector<8x1xf32>,
    %28 = arith.index_cast %arg1 : i32 to index
    %c0_17 = arith.constant 0 : index
    %c0_18 = arith.constant 0 : index
    %29 = vector.load %arg7[%28, %c0_17, %c0_18] : memref<1x1x8xf32, #tpu.memory_space<vmem>>, vector<1x1x8xf32>
    %30 = vector.shape_cast %29 : vector<1x1x8xf32> to vector<1x8xf32>
    %cst_19 = arith.constant dense<0xFF800000> : vector<8xf32>
    %31 = vector.multi_reduction <maximumf>, %22, %cst_19 [0] : vector<8x8xf32> to vector<8xf32>
    %32 = vector.shape_cast %31 : vector<8xf32> to vector<1x8xf32>
    %33 = arith.maximumf %30, %32 : vector<1x8xf32>
    %34 = arith.index_cast %arg1 : i32 to index
    %c0_20 = arith.constant 0 : index
    %c0_21 = arith.constant 0 : index
    %35 = vector.load %arg7[%34, %c0_20, %c0_21] : memref<1x1x8xf32, #tpu.memory_space<vmem>>, vector<1x1x8xf32>
    %36 = vector.shape_cast %35 : vector<1x1x8xf32> to vector<1x8xf32>
    %37 = vector.shape_cast %33 : vector<1x8xf32> to vector<1x1x8xf32>
    tpu.vector_store %arg7[%34, %c0_20, %c0_21], %37 {strides = array<i32>} : memref<1x1x8xf32, #tpu.memory_space<vmem>>, vector<1x1x8xf32>,
    %c0_i32_22 = arith.constant 0 : i32
    %38 = arith.cmpi eq, %arg1, %c0_i32_22 : i32
    %39 = arith.extui %38 : i1 to i32
    %c0_i32_23 = arith.constant 0 : i32
    %40 = arith.cmpi ne, %39, %c0_i32_23 : i32
    scf.if %40 {
      %c0_27 = arith.constant 0 : index
      %c0_28 = arith.constant 0 : index
      %46 = vector.load %arg5[%c0_27, %c0_28] : memref<8x1xf32, #tpu.memory_space<vmem>>, vector<8x1xf32>
      %c0_29 = arith.constant 0 : index
      %c0_30 = arith.constant 0 : index
      %47 = vector.load %arg6[%c0_29, %c0_30] : memref<8x1xf32, #tpu.memory_space<vmem>>, vector<8x1xf32>
      %cst_31 = arith.constant 2.000000e-01 : f32
      %48 = vector.broadcast %cst_31 : f32 to vector<8x1xf32>
      %49 = arith.subf %48, %47 : vector<8x1xf32>
      %50 = arith.addf %46, %49 : vector<8x1xf32>
      %cst_32 = arith.constant 0.000000e+00 : f32
      %51 = vector.broadcast %cst_32 : f32 to vector<8x1xf32>
      %52 = arith.maximumf %50, %51 : vector<8x1xf32>
      %c0_33 = arith.constant 0 : index
      %c0_34 = arith.constant 0 : index
      %53 = vector.load %arg9[%c0_33, %c0_34] : memref<1x1xf32, #tpu.memory_space<vmem>>, vector<1x1xf32>
      %54 = vector.shape_cast %52 : vector<8x1xf32> to vector<1x8x1xf32>
      %cst_35 = arith.constant dense<0.000000e+00> : vector<1xf32>
      %55 = vector.multi_reduction <add>, %54, %cst_35 [1, 2] : vector<1x8x1xf32> to vector<1xf32>
      %56 = vector.shape_cast %55 : vector<1xf32> to vector<1x1x1xf32>
      %57 = vector.extract %56[0, 0, 0] : f32 from vector<1x1x1xf32>
      %58 = vector.broadcast %57 : f32 to vector<1x1xf32>
      %59 = arith.addf %53, %58 : vector<1x1xf32>
      %c0_36 = arith.constant 0 : index
      %c0_37 = arith.constant 0 : index
      %60 = vector.load %arg9[%c0_36, %c0_37] : memref<1x1xf32, #tpu.memory_space<vmem>>, vector<1x1xf32>
      tpu.vector_store %arg9[%c0_36, %c0_37], %59 {strides = array<i32>} : memref<1x1xf32, #tpu.memory_space<vmem>>, vector<1x1xf32>,
    } else {
    }
    %c0_i32_24 = arith.constant 0 : i32
    %41 = arith.cmpi eq, %arg0, %c0_i32_24 : i32
    %c0_i32_25 = arith.constant 0 : i32
    %42 = arith.cmpi eq, %arg1, %c0_i32_25 : i32
    %43 = arith.andi %41, %42 : i1
    %44 = arith.extui %43 : i1 to i32
    %c0_i32_26 = arith.constant 0 : i32
    %45 = arith.cmpi ne, %44, %c0_i32_26 : i32
    scf.if %45 {
      %c0_27 = arith.constant 0 : index
      %c0_28 = arith.constant 0 : index
      %c0_29 = arith.constant 0 : index
      %46 = vector.load %arg7[%c0_27, %c0_28, %c0_29] : memref<1x1x8xf32, #tpu.memory_space<vmem>>, vector<1x1x8xf32>
      %c0_30 = arith.constant 0 : index
      %c0_31 = arith.constant 0 : index
      %c0_32 = arith.constant 0 : index
      %47 = vector.load %arg8[%c0_30, %c0_31, %c0_32] : memref<1x1x8xf32, #tpu.memory_space<vmem>>, vector<1x1x8xf32>
      %cst_33 = arith.constant 2.000000e-01 : f32
      %48 = vector.broadcast %cst_33 : f32 to vector<1x1x8xf32>
      %49 = arith.subf %48, %47 : vector<1x1x8xf32>
      %50 = arith.addf %46, %49 : vector<1x1x8xf32>
      %cst_34 = arith.constant 0.000000e+00 : f32
      %51 = vector.broadcast %cst_34 : f32 to vector<1x1x8xf32>
      %52 = arith.maximumf %50, %51 : vector<1x1x8xf32>
      %c0_35 = arith.constant 0 : index
      %c0_36 = arith.constant 0 : index
      %53 = vector.load %arg9[%c0_35, %c0_36] : memref<1x1xf32, #tpu.memory_space<vmem>>, vector<1x1xf32>
      %54 = vector.shape_cast %52 : vector<1x1x8xf32> to vector<1x1x1x8xf32>
      %cst_37 = arith.constant dense<0.000000e+00> : vector<1xf32>
      %55 = vector.multi_reduction <add>, %54, %cst_37 [1, 2, 3] : vector<1x1x1x8xf32> to vector<1xf32>
      %56 = vector.shape_cast %55 : vector<1xf32> to vector<1x1x1x1xf32>
      %57 = vector.extract %56[0, 0, 0, 0] : f32 from vector<1x1x1x1xf32>
      %58 = vector.broadcast %57 : f32 to vector<1x1xf32>
      %59 = arith.addf %53, %58 : vector<1x1xf32>
      %c0_38 = arith.constant 0 : index
      %c0_39 = arith.constant 0 : index
      %60 = vector.load %arg4[%c0_38, %c0_39] : memref<1x1xf32, #tpu.memory_space<vmem>>, vector<1x1xf32>
      tpu.vector_store %arg4[%c0_38, %c0_39], %59 {strides = array<i32>} : memref<1x1xf32, #tpu.memory_space<vmem>>, vector<1x1xf32>,
    } else {
    }
    return
  }
  func.func @transform_0(%arg0: i32, %arg1: i32) -> (i32, i32) {
    %c0_i32 = arith.constant 0 : i32
    %c0_i32_0 = arith.constant 0 : i32
    return %arg0, %c0_i32 : i32, i32
  }
  func.func @transform_1(%arg0: i32, %arg1: i32) -> (i32, i32) {
    %c0_i32 = arith.constant 0 : i32
    %c0_i32_0 = arith.constant 0 : i32
    return %arg1, %c0_i32 : i32, i32
  }
  func.func @transform_2(%arg0: i32, %arg1: i32) -> (i32, i32) {
    %c0_i32 = arith.constant 0 : i32
    %c0_i32_0 = arith.constant 0 : i32
    %c0_i32_1 = arith.constant 0 : i32
    return %c0_i32, %c0_i32_0 : i32, i32
  }
}

</mosaic_0001>

<bundles_post_ra>
// kernel: tpu_custom_call.1
= control target key start
LH: loop header
LB: loop body
LE: loop exit
PB: predicated region body
PF: predicated region fallthrough
CT: control target
= control target key end

     0   :  { %7 = vsyncpa [#allocation8], 0  ;;  %s343_s0 = inlined_call_operand.hbm [shape: f32[8,32], index: 0, kind: input, shape index: {}]   ;;  %s344_s1 = inlined_call_operand.hbm [shape: f32[8,32], index: 1, kind: input, shape index: {}]   ;;  %s345_s2 = inlined_call_operand.hbm [shape: f32[1,1], index: 2, kind: output, shape index: {}]  }
   0x1   :  { %8 = vsyncpa [#allocation11], 0 }
   0x2   :  { %9 = vsyncpa [#allocation9], 0  ;;  %s15_s11 = sshll.u32 %s343_s0, 4  ;;  %s301_s12 = smov [#allocation7]   ;;  %s16_s11 = int_to_ptr.hbm [resolvable:$true] %s15_s11 }
   0x3   :  { %s17_s13 = sshll.u32 %s301_s12, 4  ;;  %s26_s16 = sshll.u32 %s344_s1, 4  ;;  %s18_s13 = int_to_ptr.vmem [resolvable:$true] %s17_s13  ;;  %s27_s16 = int_to_ptr.hbm [resolvable:$true] %s26_s16 }
   0x4   :  { %20 = dma.hbm_to_vmem [thread:$0]  %s16_s11, 128, %s18_s13, [#allocation8]  }
   0x5   :  { %s302_s17 = smov [#allocation10]  }
   0x6   :  { %s28_s18 = sshll.u32 %s302_s17, 4  ;;  %s29_s18 = int_to_ptr.vmem [resolvable:$true] %s28_s18 }
   0x7   :  { %31 = dma.hbm_to_vmem [thread:$0]  %s27_s16, 128, %s29_s18, [#allocation11]  }
   0x8   :  { %295 = dma.done.wait [#allocation8], 128  }
   0x9   :  { %296 = vsyncadd [#allocation8], 4294967168 }
   0xa   :  { %297 = dma.done.wait [#allocation11], 128  }
   0xb   :  { %298 = vsyncadd [#allocation11], 4294967168  ;;  %vm59_vm0 = vcmask 261120   ;;  %v58_v0 = vld [vmem:[#allocation10] sm:$0xff]  ;;  %v57_v1 = vld [vmem:[#allocation7] sm:$0xff]  ;;  %vm46_vm1 = vcmask 57344   ;;  %v96_v4 = vlaneseq }
   0xc   :  { %212 = vmatpush.xpose.msk.msra.mxu0 %vm59_vm0, %v58_v0  ;;  %v303_v2 = vmov 0.0   ;;  %v304_v3 = vmov -1e+30   ;;  %vm54_vm2 = vcmask 7168   ;;  %vm107_vm4 = vcmask 64512   ;;  %s305_s19 = smov [#allocation12]  }
   0xd   :  { %48 = vst.msk [vmem:[#allocation5] sm:$0x1] %vm46_vm1, %v303_v2  ;;  %v97_v5 = vshrl.u32 %v96_v4, 7  ;;  %v101_v6 = vand.u32 127, %v96_v4  ;;  %vm49_vm5 = vcmask 0   ;;  %s199_s20 = sshll.u32 %s305_s19, 4  ;;  %s200_s20 = int_to_ptr.vmem [resolvable:$true] %s199_s20 }
   0xe   :  { %47 = vst.msk [vmem:[#allocation4] sm:$0x1] %vm46_vm1, %v304_v3  ;;  %s201_s23 = sshll.u32 %s345_s2, 4  ;;  %s202_s23 = int_to_ptr.hbm [resolvable:$true] %s201_s23 }
   0xf   :  { %213 = vmatmul.msk.f32.vlgmr.msra.gmra.mxu0 %vm59_vm0, %v57_v1  ;;  %56 = vst.msk [vmem:[#allocation3] sm:$0xff] %vm54_vm2, %v303_v2  ;;  %vm104_vm3 = vcmp.eq.s32.totalorder %v97_v5, %v101_v6 }
  0x10   :  { %55 = vst.msk [vmem:[#allocation2] sm:$0xff] %vm54_vm2, %v304_v3 }
  0x11   :  { %50 = vst.msk [vmem:[#allocation6] sm:$0x1] %vm49_vm5, %v303_v2 }
  0x14   :  { %v114_v22 = vld [vmem:[#allocation5] sm:$0x1] }
  0x15   :  { %v139_v25 = vld [vmem:[#allocation4] sm:$0x1] }
  0x16   :  { %v106_v29 = vld [vmem:[#allocation3] sm:$0xff] }
  0x17   :  { %v131_v32 = vld [vmem:[#allocation2] sm:$0xff] }
  0x18   :  { %v157_v61 = vld [vmem:[#allocation6] sm:$0x1] }
  0x8c   :  { %v83_v7 = vpop.f32.mrf.mxu0 }
  0x8d   :  { %v105_v8 = vsel %vm104_vm3, %v83_v7, 0.0  ;;  %v124_v9 = vsub.f32 0.0, %v83_v7 }
  0x8e   :  { %v108_v10 = vsel %vm107_vm4, %v105_v8, 0.0 }
  0x8f   :  { %v125_v11 = vsel %vm104_vm3, %v124_v9, %v83_v7  ;;  %109 = vadd.xlane.f32.xlu0 %v108_v10  ;;  %v115_v12 = vrot.slane %v108_v10, 4 }
  0x90   :  { %v133_v13 = vsel %vm107_vm4, %v125_v11, -inf }
  0x91   :  { %v116_v14 = vadd.f32 %v115_v12, %v108_v10  ;;  %v140_v15 = vrot.slane %v133_v13, 4 }
  0x93   :  { %v117_v16 = vrot.slane %v116_v14, 2  ;;  %v141_v17 = vmax.f32 %v133_v13, %v140_v15 }
  0x95   :  { %v118_v18 = vadd.f32 %v117_v16, %v116_v14  ;;  %v142_v19 = vrot.slane %v141_v17, 2 }
  0x97   :  { %v119_v20 = vrot.slane %v118_v18, 1  ;;  %v143_v21 = vmax.f32 %v141_v17, %v142_v19  ;;  %134 = vmax.xlane.f32.xlu0 %v133_v13 }
  0x99   :  { %v120_v23 = vadd.f32 %v119_v20, %v118_v18  ;;  %v144_v24 = vrot.slane %v143_v21, 1 }
  0x9b   :  { %v145_v26 = vmax.f32 %v143_v21, %v144_v24  ;;  %v121_v27 = vadd.f32 %v120_v23, %v114_v22 }
  0x9d   :  { %123 = vst.msk [vmem:[#allocation5] sm:$0x1] %vm46_vm1, %v121_v27  ;;  %v146_v28 = vmax.f32 %v139_v25, %v145_v26 }
  0x9f   :  { %148 = vst.msk [vmem:[#allocation4] sm:$0x1] %vm46_vm1, %v146_v28 }
  0xa4   :  { %v175_v36 = vld [vmem:[#allocation5] sm:$0x1] }
  0xa5   :  { %v176_v40 = vsub.f32 0.2, %v175_v36 }
  0xa6   :  { %v174_v41 = vld [vmem:[#allocation4] sm:$0x1] }
  0xa7   :  { %v177_v44 = vadd.f32 %v176_v40, %v174_v41 }
  0xa9   :  { %v178_v45 = vmax.f32 %v177_v44, 0.0 }
  0xab   :  { %v180_v46 = vsel %vm46_vm1, %v178_v45, 0.0 }
 0x102   :  { %v110_v30 = vpop.xlane.xlu0 %109 }
 0x103   :  { %v111_v31 = vadd.f32 %v110_v30, %v106_v29 }
 0x105   :  { %113 = vst.msk [vmem:[#allocation3] sm:$0xff] %vm54_vm2, %v111_v31 }
 0x10a   :  { %v135_v33 = vpop.xlane.xlu0 %134 }
 0x10b   :  { %v136_v34 = vmax.f32 %v131_v32, %v135_v33 }
 0x10c   :  { %v153_v35 = vld [vmem:[#allocation3] sm:$0xff] }
 0x10d   :  { %138 = vst.msk [vmem:[#allocation2] sm:$0xff] %vm54_vm2, %v136_v34  ;;  %v154_v37 = vsub.f32 0.2, %v153_v35 }
 0x114   :  { %v152_v38 = vld [vmem:[#allocation2] sm:$0xff] }
 0x115   :  { %v155_v39 = vadd.f32 %v154_v37, %v152_v38 }
 0x117   :  { %v156_v42 = vmax.f32 %v155_v39, 0.0 }
 0x119   :  { %v158_v43 = vsel %vm54_vm2, %v156_v42, 0.0 }
 0x11a   :  { %159 = vadd.xlane.f32.xlu1 %v158_v43 }
 0x122   :  { %181 = vadd.xlane.f32.xlu1 %v180_v46 }
 0x18d   :  { %v160_v47 = vpop.xlane.xlu1 %159 }
 0x18e   :  { %v161_v48 = vrot.slane %v160_v47, 4 }
 0x190   :  { %v162_v49 = vadd.f32 %v161_v48, %v160_v47 }
 0x192   :  { %v163_v50 = vrot.slane %v162_v49, 2 }
 0x194   :  { %v164_v51 = vadd.f32 %v163_v50, %v162_v49 }
 0x195   :  { %v182_v52 = vpop.xlane.xlu1 %181 }
 0x196   :  { %v183_v53 = vrot.slane %v182_v52, 4  ;;  %v165_v54 = vrot.slane %v164_v51, 1 }
 0x198   :  { %v184_v55 = vadd.f32 %v183_v53, %v182_v52  ;;  %v166_v56 = vadd.f32 %v165_v54, %v164_v51 }
 0x19a   :  { %v185_v57 = vrot.slane %v184_v55, 2  ;;  %214 = vpush %v166_v56 }
 0x19c   :  { %v186_v58 = vadd.f32 %v185_v57, %v184_v55 }
 0x19e   :  { %v187_v59 = vrot.slane %v186_v58, 1 }
 0x1a0   :  { %v188_v60 = vadd.f32 %v187_v59, %v186_v58 }
 0x1a2   :  { %216 = vpush %v188_v60 }
 0x1cb   :  { %s215_s0 = spop %214 }
 0x1cc   :  { %v168_v62 = vstv %s215_s0 }
 0x1cd   :  { %v169_v63 = vadd.f32 %v168_v62, %v157_v61 }
 0x1cf   :  { %171 = vst.msk [vmem:[#allocation6] sm:$0x1] %vm49_vm5, %v169_v63 }
 0x1d3   :  { %s217_s1 = spop %216 }
 0x1d4   :  { %v190_v1 = vstv %s217_s1 }
 0x1d6   :  { %v179_v0 = vld [vmem:[#allocation6] sm:$0x1] }
 0x1d7   :  { %v191_v2 = vadd.f32 %v190_v1, %v179_v0 }
 0x1d9   :  { %193 = vst.msk [vmem:[#allocation12] sm:$0x1] %vm49_vm5, %v191_v2 }
 0x1da   :  { %204 = dma.vmem_to_hbm [thread:$0]  %s200_s20, 16, %s202_s23, [#allocation9]  }
 0x1db   :  { %299 = dma.done.wait [#allocation9], 16  }
 0x1dc   :  { %300 = vsyncadd [#allocation9], 4294967280 }
 0x1dd   :  { %209 = vsyncpa [#allocation8], 1 }
 0x1de   :  { %210 = vsyncpa [#allocation11], 1 }
 0x1df   :  { %211 = vsyncpa [#allocation9], 1 }

</bundles_post_ra>
